<compile_context>
chip_gen: v7x
topology: tpu7x:2x2x1
jax: 0.10.0
libtpu: 0.0.40
codegen_flags: <defaults>
</compile_context>

<pallas_src>
import math

import jax
import jax.numpy as jnp
from jax.experimental import pallas as pl
from jax.experimental.pallas import tpu as pltpu


def _round_up(x, m):
    return ((x + m - 1) // m) * m


def _temporal_embed_kernel(x_ref, expand_ref, freq_ref, phase_ref, o_ref):
    # x_ref:      (TR, fold)   f32  -- `fold` consecutive time values per row
    # expand_ref: (fold, W)    f32  -- one-hot lane-expansion matrix (exact 0/1)
    # freq_ref:   (1, W)       f32  -- freq[j] = div_term[(j % d_model) // 2]
    # phase_ref:  (1, W)       f32  -- 0.0 on even embedding cols, pi/2 on odd
    # o_ref:      (TR, W)      out dtype
    #
    # Lane expansion through the idle MXU: xw[r, j] = x[r, j // d_model].
    xw = jnp.dot(x_ref[...], expand_ref[...], preferred_element_type=jnp.float32)
    # One EUP transcendental per element: cos(t) == sin(t + pi/2).
    o_ref[...] = jnp.sin(xw * freq_ref[...] + phase_ref[...]).astype(o_ref.dtype)


def temporal_embedding_forward(x, d_model, *, tile_rows=1024, out_dtype=jnp.float32):
    """Pallas equivalent of TemporalEmbedding.forward (sinusoidal encoding).

    x: any-shaped array of (integer-valued) time features.
    returns: out_dtype array of shape x.shape + (d_model,).
    tile_rows: main tuning knob (rows of the folded output processed per step).
    out_dtype: set to jnp.bfloat16 to halve the (dominant) output writeback if
               downstream consumers tolerate it.
    """
    orig_shape = x.shape
    x_flat = x.reshape(-1).astype(jnp.float32)
    n = int(x_flat.shape[0])

    # ---- lane folding: make the output last dim a multiple of 128 ----------
    if d_model % 128 == 0:
        fold = 1
    else:
        fold = math.lcm(d_model, 128) // d_model
        if fold * d_model > 4096:      # cap block width; fall back to masked stores
            fold = 1
    width = fold * d_model

    rows = -(-n // fold)
    tile_rows_eff = min(tile_rows, max(8, _round_up(rows, 8)))
    rows_pad = _round_up(rows, tile_rows_eff)
    n_pad = rows_pad * fold
    if n_pad != n:
        x_flat = jnp.pad(x_flat, (0, n_pad - n))
    x2d = x_flat.reshape(rows_pad, fold)

    # ---- small constant tables (plain-JAX glue) ----------------------------
    col = jnp.arange(d_model)
    div_term = jnp.exp(
        jnp.arange(0, d_model, 2, dtype=jnp.float32)
        * (-(math.log(1000000.0) / d_model))
    )                                                           # (ceil(d/2),)
    freq_row = div_term[col // 2].astype(jnp.float32)           # (d_model,)
    phase_row = jnp.where(col % 2 == 0, 0.0, math.pi / 2.0).astype(jnp.float32)
    freq = jnp.tile(freq_row, fold).reshape(1, width)
    phase = jnp.tile(phase_row, fold).reshape(1, width)
    expand = (jnp.arange(width)[None, :] // d_model
              == jnp.arange(fold)[:, None]).astype(jnp.float32)  # (fold, width)

    grid = (rows_pad // tile_rows_eff,)
    pe = pl.pallas_call(
        _temporal_embed_kernel,
        out_shape=jax.ShapeDtypeStruct((rows_pad, width), out_dtype),
        grid_spec=pltpu.PrefetchScalarGridSpec(
            num_scalar_prefetch=0,
            grid=grid,
            in_specs=[
                pl.BlockSpec((tile_rows_eff, fold), lambda i: (i, 0)),
                pl.BlockSpec((fold, width), lambda i: (0, 0)),
                pl.BlockSpec((1, width), lambda i: (0, 0)),
                pl.BlockSpec((1, width), lambda i: (0, 0)),
            ],
            out_specs=pl.BlockSpec((tile_rows_eff, width), lambda i: (i, 0)),
        ),
        compiler_params=pltpu.CompilerParams(
            dimension_semantics=("parallel",),
            vmem_limit_bytes=32 * 1024 * 1024,
        ),
    )(x2d, expand, freq, phase)

    # Unfold: (rows_pad, fold*d_model) row-major == (n_pad, d_model).
    pe = pe.reshape(n_pad, d_model)[:n]
    return pe.reshape(*orig_shape, d_model)


def init_embedding_tables(d_model, freq='h', freq_of_minute=15, seed=0):
    """Deterministic init of the embedding tables, mirroring __init__ shapes."""
    # TODO(synk): these tables are never consumed by forward() in the reference
    # module, so they are not part of the Pallas kernel.
    minute_size = int(60 / freq_of_minute)
    sizes = {
        "hour_embed": 24,
        "weekday_embed": 7,
        "day_embed": 32,
        "month_embed": 13,
    }
    if freq == 't':
        sizes["minute_embed"] = minute_size
    key = jax.random.PRNGKey(seed)
    tables = {}
    for name, vocab in sorted(sizes.items()):
        key, sub = jax.random.split(key)
        tables[name] = jax.random.normal(sub, (vocab, d_model), dtype=jnp.float32)
    return tables


def _reference(x, d_model):
    """Pure-JAX replica of the torch forward (sin on even cols, cos on odd)."""
    xf = x.reshape(-1).astype(jnp.float32)[:, None]
    div_term = jnp.exp(
        jnp.arange(0, d_model, 2, dtype=jnp.float32)
        * (-(math.log(1000000.0) / d_model))
    )
    pe = jnp.zeros((xf.shape[0], d_model), jnp.float32)
    pe = pe.at[:, 0::2].set(jnp.sin(xf * div_term))
    if d_model % 2 == 0:
        pe = pe.at[:, 1::2].set(jnp.cos(xf * div_term))
    else:
        pe = pe.at[:, 1::2].set(jnp.cos(xf * div_term[:-1]))
    return pe.reshape(*x.shape, d_model)


if __name__ == "__main__":
    d_model = 32
    key = jax.random.PRNGKey(0)
    k1, k2 = jax.random.split(key)

    _ = init_embedding_tables(d_model)  # parity with module __init__ (unused by forward)

    # Primary check: shapes implied by the module (batch=2, seq=8, 4 time feats).
    x = jax.random.randint(k1, (2, 8, 4), 0, 24).astype(jnp.float32)
    pe = jax.block_until_ready(temporal_embedding_forward(x, d_model))
    ref = _reference(x, d_model)
    assert pe.shape == (2, 8, 4, d_model), pe.shape
    # cos(t) vs sin(t + pi/2) differ by a few ulps -> tolerance 1e-5.
    assert jnp.allclose(pe, ref, atol=1e-5), float(jnp.max(jnp.abs(pe - ref)))

    # Secondary check: larger N to exercise the multi-step grid path.
    x2 = jax.random.randint(k2, (8, 256, 4), 0, 24).astype(jnp.float32)
    pe2 = jax.block_until_ready(temporal_embedding_forward(x2, d_model))
    ref2 = _reference(x2, d_model)
    assert pe2.shape == (8, 256, 4, d_model), pe2.shape
    assert jnp.allclose(pe2, ref2, atol=1e-5), float(jnp.max(jnp.abs(pe2 - ref2)))

    print("KERNEL_OK")
</pallas_src>

<mosaic_0001>
module attributes {stable_mosaic.version = 11 : i64} {
  func.func @_temporal_embed_kernel(%arg0: i32, %arg1: memref<16x4xf32, #tpu.memory_space<vmem>>, %arg2: memref<4x128xf32, #tpu.memory_space<vmem>>, %arg3: memref<1x128xf32, #tpu.memory_space<vmem>>, %arg4: memref<1x128xf32, #tpu.memory_space<vmem>>, %arg5: memref<16x128xf32, #tpu.memory_space<vmem>>) attributes {dimension_semantics = [#tpu.dimension_semantics<parallel>], iteration_bounds = array<i64: 1>, scalar_prefetch = 0 : i64, scratch_operands = 0 : i64, tpu.core_type = #tpu.core_type<tc>, window_params = [{transform_indices = @transform_0, window_bounds = array<i64: 16, 4>}, {pipeline_mode = #tpu.pipeline_mode<synchronous>, transform_indices = @transform_1, window_bounds = array<i64: 4, 128>}, {pipeline_mode = #tpu.pipeline_mode<synchronous>, transform_indices = @transform_2, window_bounds = array<i64: 1, 128>}, {pipeline_mode = #tpu.pipeline_mode<synchronous>, transform_indices = @transform_3, window_bounds = array<i64: 1, 128>}, {transform_indices = @transform_4, window_bounds = array<i64: 16, 128>}]} {
    %c0 = arith.constant 0 : index
    %c0_0 = arith.constant 0 : index
    %0 = vector.load %arg1[%c0, %c0_0] : memref<16x4xf32, #tpu.memory_space<vmem>>, vector<16x4xf32>
    %c0_1 = arith.constant 0 : index
    %c0_2 = arith.constant 0 : index
    %1 = vector.load %arg2[%c0_1, %c0_2] : memref<4x128xf32, #tpu.memory_space<vmem>>, vector<4x128xf32>
    %cst = arith.constant dense<0.000000e+00> : vector<16x128xf32>
    %2 = tpu.matmul %0, %1, %cst {dimension_numbers = #tpu.dot_dimension_numbers<[1], [0], [0], [1], [0, 0, 1, 1], [], []>} : vector<16x4xf32>, vector<4x128xf32>, vector<16x128xf32> -> vector<16x128xf32>
    %c0_3 = arith.constant 0 : index
    %c0_4 = arith.constant 0 : index
    %3 = vector.load %arg3[%c0_3, %c0_4] : memref<1x128xf32, #tpu.memory_space<vmem>>, vector<1x128xf32>
    %4 = vector.broadcast %3 : vector<1x128xf32> to vector<16x128xf32>
    %5 = arith.mulf %2, %4 : vector<16x128xf32>
    %c0_5 = arith.constant 0 : index
    %c0_6 = arith.constant 0 : index
    %6 = vector.load %arg4[%c0_5, %c0_6] : memref<1x128xf32, #tpu.memory_space<vmem>>, vector<1x128xf32>
    %7 = vector.broadcast %6 : vector<1x128xf32> to vector<16x128xf32>
    %8 = arith.addf %5, %7 : vector<16x128xf32>
    %9 = math.sin %8 : vector<16x128xf32>
    %c0_7 = arith.constant 0 : index
    %c0_8 = arith.constant 0 : index
    %10 = vector.load %arg5[%c0_7, %c0_8] : memref<16x128xf32, #tpu.memory_space<vmem>>, vector<16x128xf32>
    tpu.vector_store %arg5[%c0_7, %c0_8], %9 {strides = array<i32>} : memref<16x128xf32, #tpu.memory_space<vmem>>, vector<16x128xf32>,
    return
  }
  func.func @transform_0(%arg0: i32) -> (i32, i32) {
    %c0_i32 = arith.constant 0 : i32
    %c0_i32_0 = arith.constant 0 : i32
    return %arg0, %c0_i32 : i32, i32
  }
  func.func @transform_1(%arg0: i32) -> (i32, i32) {
    %c0_i32 = arith.constant 0 : i32
    %c0_i32_0 = arith.constant 0 : i32
    %c0_i32_1 = arith.constant 0 : i32
    return %c0_i32, %c0_i32_0 : i32, i32
  }
  func.func @transform_2(%arg0: i32) -> (i32, i32) {
    %c0_i32 = arith.constant 0 : i32
    %c0_i32_0 = arith.constant 0 : i32
    %c0_i32_1 = arith.constant 0 : i32
    return %c0_i32, %c0_i32_0 : i32, i32
  }
  func.func @transform_3(%arg0: i32) -> (i32, i32) {
    %c0_i32 = arith.constant 0 : i32
    %c0_i32_0 = arith.constant 0 : i32
    %c0_i32_1 = arith.constant 0 : i32
    return %c0_i32, %c0_i32_0 : i32, i32
  }
  func.func @transform_4(%arg0: i32) -> (i32, i32) {
    %c0_i32 = arith.constant 0 : i32
    %c0_i32_0 = arith.constant 0 : i32
    return %arg0, %c0_i32 : i32, i32
  }
}

</mosaic_0001>

<bundles_post_ra>
// kernel: tpu_custom_call.1
= control target key start
LH: loop header
LB: loop body
LE: loop exit
PB: predicated region body
PF: predicated region fallthrough
CT: control target
= control target key end

     0   :  { %vm28_vm0 = vcmask 1043456   ;;  %vm21_vm1 = vcmask 31744   ;;  %s544_s0 = inlined_call_operand.vmem [shape: f32[16,4], index: 0, kind: input, shape index: {}]   ;;  %s545_s1 = inlined_call_operand.vmem [shape: f32[4,128], index: 1, kind: input, shape index: {}]   ;;  %s546_s2 = inlined_call_operand.vmem [shape: f32[1,128], index: 2, kind: input, shape index: {}]   ;;  %s547_s3 = inlined_call_operand.vmem [shape: f32[1,128], index: 3, kind: input, shape index: {}]   ;;  %s548_s4 = inlined_call_operand.hbm [shape: f32[16,128], index: 4, kind: output, shape index: {}]  }
   0x1   :  { %v20_v0 = vld [vmem:[%s545_s1] sm:$0xf]  ;;  %v19_v2 = vld [vmem:[%s544_s0 + $0x8] sm:$0xff] }
   0x2   :  { %v18_v1 = vld [vmem:[%s544_s0] sm:$0xff]  ;;  %367 = vmatprep.subr.msk.mxu0 %vm28_vm0, %v20_v0 }
   0x3   :  { %369 = vmatprep.mubr.msk.f32.mxu0 %vm21_vm1, %v18_v1 }
   0x4   :  { %9 = vsyncpa [#allocation3], 0  ;;  %368 = vmatpush3.msk.msra.mxu0 %vm28_vm0, %v20_v0  ;;  %v354_v3 = vld [vmem:[%s546_s2] ss:$0 sm:$0xff]  ;;  %v421_v31 = vmov 683565275  }
   0x5   :  { %370 = vmatmul.mubr.msk.f32.vlgmr.msra.gmra.mrb[0].mxu0 %vm21_vm1, %v19_v2  ;;  %v355_v5 = vld [vmem:[%s547_s3] ss:$0 sm:$0xff]  ;;  %v422_v35 = vmov 2475754826   ;;  %v423_v37 = vmov 2131351028  }
   0x6   :  { %v424_v39 = vmov 2102212464   ;;  %v425_v41 = vmov 920167782   ;;  %v426_v48 = vmov 1326507024  }
   0x7   :  { %s427_s0 = smov [#allocation2]  }
   0x8   :  { %s340_s2 = sshll.u32 %s427_s0, 4  ;;  %s341_s2 = int_to_ptr.vmem [resolvable:$true] %s340_s2 }
   0x9   :  { %s397_s3 = scalar_lea.vmem %s341_s2, 256  ;;  %p402_p1 = scmp.lt.s32.totalorder %s341_s2, %s341_s2 }
   0xa   :  { %p398_p0 = scmp.ne.s32.totalorder %s341_s2, %s397_s3  ;;  %p403_p2 = scmp.lt.s32.totalorder %s397_s3, %s397_s3 }
   0xc   :  { %p404_p3 = por %p403_p2, %p402_p1 }
   0xe   :  { %p405_p4 = pnand %p404_p3, %p398_p0 }
  0xd8   :  { %v371_v4 = vpop.f32.mrb[0].mxu0 }
  0xd9   :  { %v115_v6 = vmul.f32 %v371_v4, %v354_v3  ;;  %v98_v7 = vpop.f32.mrb[1].mxu0 }
  0xda   :  { %v114_v8 = vmul.f32 %v354_v3, %v98_v7 }
  0xdb   :  { %v470_v9 = vadd.f32 %v355_v5, %v115_v6 }
  0xdc   :  { %v472_v10 = vadd.f32 %v355_v5, %v114_v8 }
  0xdd   :  { %v229_v11 = vand.u32 2147483647, %v470_v9  ;;  %v232_v12 = vand.u32 2139095040, %v470_v9  ;;  %vm231_vm0 = vcmp.lt.s32.totalorder %v470_v9, 0 }
  0xde   :  { %v128_v13 = vand.u32 2139095040, %v472_v10  ;;  %v125_v16 = vand.u32 2147483647, %v472_v10 }
  0xdf   :  { %v233_v14 = vshrl.u32 %v232_v12, 23  ;;  %v236_v15 = vand.u32 8388607, %v229_v11  ;;  %vm230_vm1 = vcmp.le.f32.partialorder %v229_v11, 0.7853982 }
  0xe0   :  { %v129_v17 = vshrl.u32 %v128_v13, 23  ;;  %v482_v22 = vand.u32 8388607, %v125_v16 }
  0xe1   :  { %v360_v18 = vadd.s32 4294967169, %v233_v14  ;;  %v237_v21 = vor.u32 8388608, %v236_v15 }
  0xe2   :  { %v356_v19 = vadd.s32 4294967169, %v129_v17  ;;  %v133_v29 = vor.u32 8388608, %v482_v22 }
  0xe3   :  { %v239_v20 = vadd.s32 1, %v360_v18  ;;  %v484_v28 = vshll.u32 %v237_v21, 8 }
  0xe4   :  { %v135_v23 = vadd.s32 1, %v356_v19 }
  0xe5   :  { %vm240_vm2 = vcmp.gt.s32.totalorder %v239_v20, 0 }
  0xe6   :  { %v241_v24 = vsel %vm240_vm2, %v239_v20, 0  ;;  %vm136_vm3 = vcmp.gt.s32.totalorder %v135_v23, 0  ;;  %vm127_vm2 = vcmp.lt.s32.totalorder %v472_v10, 0 }
  0xe7   :  { %v242_v25 = vshrl.u32 %v241_v24, 5  ;;  %v243_v26 = vand.u32 31, %v241_v24  ;;  %v137_v27 = vsel %vm136_vm3, %v135_v23, 0  ;;  %v173_v23 = vshll.u32 %v133_v29, 8 }
  0xe8   :  { %v487_v33 = vshrl.u32 %v137_v27, 5  ;;  %v139_v34 = vand.u32 31, %v137_v27  ;;  %vm126_vm3 = vcmp.le.f32.partialorder %v125_v16, 0.7853982 }
  0xe9   :  { %v244_v30 = vsub.s32 32, %v243_v26  ;;  %v246_v32 = vshll.u32 %v421_v31, %v243_v26  ;;  %v249_v36 = vshll.u32 %v422_v35, %v243_v26  ;;  %v252_v38 = vshll.u32 %v423_v37, %v243_v26 }
  0xea   :  { %v255_v40 = vshll.u32 %v424_v39, %v243_v26  ;;  %v258_v42 = vshll.u32 %v425_v41, %v243_v26  ;;  %vm261_vm4 = vcmp.lt.s32.totalorder %v242_v25, 1  ;;  %vm262_vm5 = vcmp.lt.s32.totalorder %v242_v25, 2 }
  0xeb   :  { %v247_v43 = vshrl.u32 %v422_v35, %v244_v30  ;;  %v250_v44 = vshrl.u32 %v423_v37, %v244_v30  ;;  %v253_v45 = vshrl.u32 %v424_v39, %v244_v30  ;;  %v245_v46 = vshrl.u32 %v421_v31, %v244_v30 }
  0xec   :  { %v256_v47 = vshrl.u32 %v425_v41, %v244_v30  ;;  %v259_v49 = vshrl.u32 %v426_v48, %v244_v30  ;;  %v140_v53 = vsub.s32 32, %v139_v34  ;;  %vm263_vm6 = vcmp.lt.s32.totalorder %v242_v25, 3 }
  0xed   :  { %v248_v50 = vor.u32 %v247_v43, %v246_v32  ;;  %v251_v51 = vor.u32 %v250_v44, %v249_v36  ;;  %v254_v52 = vor.u32 %v253_v45, %v252_v38  ;;  %vm264_vm7 = vcmp.lt.s32.totalorder %v242_v25, 4 }
  0xee   :  { %v257_v54 = vor.u32 %v256_v47, %v255_v40  ;;  %v260_v55 = vor.u32 %v259_v49, %v258_v42  ;;  %v142_v63 = vshll.u32 %v421_v31, %v139_v34  ;;  %v143_v2 = vshrl.u32 %v422_v35, %v140_v53 }
  0xef   :  { %v265_v56 = vsel %vm261_vm4, %v245_v46, %v248_v50  ;;  %v266_v57 = vsel %vm264_vm7, %v254_v52, 2102212464  ;;  %v269_v58 = vsel %vm261_vm4, %v248_v50, %v251_v51  ;;  %v273_v59 = vsel %vm261_vm4, %v251_v51, %v254_v52 }
  0xf0   :  { %v267_v60 = vsel %vm263_vm6, %v251_v51, %v266_v57  ;;  %v270_v61 = vsel %vm264_vm7, %v257_v54, 920167782  ;;  %v274_v62 = vsel %vm264_vm7, %v260_v55, 1326507024  ;;  %v145_v3 = vshll.u32 %v422_v35, %v139_v34 }
  0xf1   :  { %v271_v0 = vsel %vm263_vm6, %v254_v52, %v270_v61  ;;  %v275_v1 = vsel %vm263_vm6, %v257_v54, %v274_v62  ;;  %v268_v4 = vsel %vm262_vm5, %v265_v56, %v267_v60  ;;  %v146_v7 = vshrl.u32 %v423_v37, %v140_v53 }
  0xf2   :  { %v272_v5 = vsel %vm262_vm5, %v269_v58, %v271_v0  ;;  %v276_v6 = vsel %vm262_vm5, %v273_v59, %v275_v1  ;;  %v144_v15 = vor.u32 %v143_v2, %v142_v63  ;;  %v148_v18 = vshll.u32 %v423_v37, %v139_v34 }
  0xf3   :  { %v496_v8 = vmul.u32.u64.low %v484_v28, %v276_v6  ;;  %v497_v12 = vmul.u32.u64.high %v484_v28, %v276_v6, %v496_v8  ;;  %v500_v13 = vmul.u32.u64.low %v484_v28, %v272_v5  ;;  %v501_v14 = vmul.u32.u64.high %v484_v28, %v272_v5, %v500_v13 }
  0xf4   :  { %v147_v17 = vor.u32 %v146_v7, %v145_v3  ;;  %v149_v19 = vshrl.u32 %v424_v39, %v140_v53  ;;  %v151_v20 = vshll.u32 %v424_v39, %v139_v34  ;;  %v152_v21 = vshrl.u32 %v425_v41, %v140_v53 }
  0xf5   :  { %v155_v22 = vshrl.u32 %v426_v48, %v140_v53  ;;  %v284_v24 = vmul.u32 %v484_v28, %v268_v4  ;;  %v141_v25 = vshrl.u32 %v421_v31, %v140_v53  ;;  %v154_v27 = vshll.u32 %v425_v41, %v139_v34 }
  0xf6   :  { %v150_v26 = vor.u32 %v149_v19, %v148_v18  ;;  %vm286_vm8 = vc.u32 %v497_v12, %v500_v13  ;;  %v287_v30 = vadd.s32 1, %v501_v14  ;;  %v153_v32 = vor.u32 %v152_v21, %v151_v20 }
  0xf7   :  { %vm157_vm9 = vcmp.lt.s32.totalorder %v487_v33, 1  ;;  %v156_v35 = vor.u32 %v155_v22, %v154_v27  ;;  %vm159_vm10 = vcmp.lt.s32.totalorder %v487_v33, 3  ;;  %vm160_vm11 = vcmp.lt.s32.totalorder %v487_v33, 4 }
  0xf8   :  { %v165_v36 = vsel %vm157_vm9, %v144_v15, %v147_v17  ;;  %v288_v29 = vsel %vm286_vm8, %v287_v30, %v501_v14  ;;  %v162_v37 = vsel %vm160_vm11, %v150_v26, 2102212464  ;;  %v166_v28 = vsel %vm160_vm11, %v153_v32, 920167782 }
  0xf9   :  { %v169_v31 = vsel %vm157_vm9, %v147_v17, %v150_v26  ;;  %v289_v38 = vadd.s32 %v288_v29, %v284_v24  ;;  %vm158_vm12 = vcmp.lt.s32.totalorder %v487_v33, 2  ;;  %v167_v34 = vsel %vm159_vm10, %v150_v26, %v166_v28 }
  0xfa   :  { %v170_v39 = vsel %vm160_vm11, %v156_v35, 1326507024  ;;  %v161_v40 = vsel %vm157_vm9, %v141_v25, %v144_v15  ;;  %v163_v41 = vsel %vm159_vm10, %v147_v17, %v162_v37  ;;  %v168_v42 = vsel %vm158_vm12, %v165_v36, %v167_v34 }
  0xfb   :  { %v171_v43 = vsel %vm159_vm10, %v153_v32, %v170_v39  ;;  %v290_v44 = vadd.s32 536870912, %v289_v38  ;;  %v511_v46 = vmul.u32.u64.low %v173_v23, %v168_v42  ;;  %v512_v47 = vmul.u32.u64.high %v173_v23, %v168_v42, %v511_v46 }
  0xfc   :  { %v172_v45 = vsel %vm158_vm12, %v169_v31, %v171_v43  ;;  %v164_v51 = vsel %vm158_vm12, %v161_v40, %v163_v41  ;;  %v285_v3 = vadd.s32 %v500_v13, %v497_v12  ;;  %vm321_vm7 = vweird.f32 %v470_v9 }
  0xfd   :  { %v514_v48 = vmul.u32.u64.low %v173_v23, %v172_v45  ;;  %v515_v49 = vmul.u32.u64.high %v173_v23, %v172_v45, %v514_v48  ;;  %v291_v50 = vshrl.u32 %v290_v44, 30  ;;  %v183_v53 = vadd.s32 1, %v512_v47 }
  0xfe   :  { %v180_v33 = vmul.u32 %v173_v23, %v164_v51  ;;  %vm217_vm11 = vweird.f32 %v472_v10 }
  0xff   :  { %v292_v52 = vshll.u32 %v291_v50, 30  ;;  %vm182_vm13 = vc.u32 %v515_v49, %v511_v46  ;;  %v181_v24 = vadd.s32 %v511_v46, %v515_v49  ;;  %v315_v13 = vsub.s32 4, %v291_v50 }
 0x100   :  { %v184_v55 = vsel %vm182_vm13, %v183_v53, %v512_v47 }
 0x101   :  { %v293_v54 = vsub.s32 %v289_v38, %v292_v52  ;;  %v185_v56 = vadd.s32 %v184_v55, %v180_v33  ;;  %v316_v28 = vsel %vm231_vm0, %v315_v13, %v291_v50 }
 0x102   :  { %v318_v40 = vsel %vm230_vm1, 0, %v316_v28 }
 0x103   :  { %v295_v57 = vsub.s32 0, %v293_v54  ;;  %v186_v58 = vadd.s32 536870912, %v185_v56  ;;  %v322_v43 = vadd.s32 3, %v318_v40 }
 0x105   :  { %v361_v59 = vmin.u32 %v295_v57, %v293_v54  ;;  %v187_v60 = vshrl.u32 %v186_v58, 30  ;;  %v323_v47 = vand.u32 3, %v322_v43 }
 0x107   :  { %v297_v61 = vclz %v361_v59  ;;  %v188_v62 = vshll.u32 %v187_v60, 30  ;;  %v211_v42 = vsub.s32 4, %v187_v60  ;;  %vm328_vm4 = vcmp.eq.s32.totalorder %v323_v47, 2 }
 0x108   :  { %vm325_vm5 = vcmp.eq.s32.totalorder %v323_v47, 0  ;;  %vm324_vm6 = vcmp.lt.s32.totalorder %v323_v47, 2 }
 0x109   :  { %v362_v63 = vadd.s32 4294967294, %v297_v61  ;;  %v189_v0 = vsub.s32 %v185_v56, %v188_v62  ;;  %v212_v45 = vsel %vm127_vm2, %v211_v42, %v187_v60 }
 0x10a   :  { %v214_v49 = vsel %vm126_vm3, 0, %v212_v45 }
 0x10b   :  { %vm363_vm14 = vcmp.lt.s32.totalorder %v362_v63, 0  ;;  %v191_v2 = vsub.s32 0, %v189_v0  ;;  %v218_v53 = vadd.s32 3, %v214_v49 }
 0x10c   :  { %v300_v1 = vsel %vm363_vm14, 0, %v362_v63 }
 0x10d   :  { %v301_v4 = vsub.s32 32, %v300_v1  ;;  %v305_v5 = vsub.s32 4294967266, %v300_v1  ;;  %v357_v6 = vmin.u32 %v191_v2, %v189_v0  ;;  %v302_v7 = vshll.u32 %v293_v54, %v300_v1 }
 0x10e   :  { %v219_v56 = vand.u32 3, %v218_v53 }
 0x10f   :  { %v303_v8 = vshrl.u32 %v285_v3, %v301_v4  ;;  %v306_v14 = vadd.s32 127, %v305_v5  ;;  %v193_v15 = vclz %v357_v6 }
 0x110   :  { %vm224_vm8 = vcmp.eq.s32.totalorder %v219_v56, 2  ;;  %vm221_vm9 = vcmp.eq.s32.totalorder %v219_v56, 0  ;;  %vm220_vm10 = vcmp.lt.s32.totalorder %v219_v56, 2 }
 0x111   :  { %v304_v17 = vor.u32 %v303_v8, %v302_v7  ;;  %v307_v18 = vshll.u32 %v306_v14, 23  ;;  %v358_v19 = vadd.s32 4294967294, %v193_v15 }
 0x113   :  { %v308_v20 = vor.u32 4788187, %v307_v18  ;;  %vm359_vm15 = vcmp.lt.s32.totalorder %v358_v19, 0  ;;  %v311_v22 = vcvt.s32.f32 %v304_v17 }
 0x114   :  { %v196_v23 = vsel %vm359_vm15, 0, %v358_v19 }
 0x115   :  { %v309_v21 = vand.u32 2147483647, %v308_v20  ;;  %v197_v25 = vsub.s32 32, %v196_v23  ;;  %v201_v26 = vsub.s32 4294967266, %v196_v23  ;;  %v198_v27 = vshll.u32 %v189_v0, %v196_v23 }
 0x117   :  { %v312_v12 = vmul.f32 %v311_v22, %v309_v21  ;;  %v199_v30 = vshrl.u32 %v181_v24, %v197_v25  ;;  %v202_v32 = vadd.s32 127, %v201_v26 }
 0x119   :  { %v313_v35 = vxor.u32 2147483648, %v312_v12  ;;  %v200_v36 = vor.u32 %v199_v30, %v198_v27  ;;  %v203_v29 = vshll.u32 %v202_v32, 23 }
 0x11b   :  { %v314_v37 = vsel %vm231_vm0, %v313_v35, %v312_v12  ;;  %v204_v38 = vor.u32 4788187, %v203_v29  ;;  %v207_v39 = vcvt.s32.f32 %v200_v36 }
 0x11c   :  { %v317_v31 = vsel %vm230_vm1, %v470_v9, %v314_v37 }
 0x11d   :  { %389 = vcosq.f32 %v317_v31  ;;  %v205_v34 = vand.u32 2147483647, %v204_v38 }
 0x11e   :  { %391 = vsinq.f32 %v317_v31 }
 0x11f   :  { %v208_v41 = vmul.f32 %v207_v39, %v205_v34 }
 0x121   :  { %v209_v44 = vxor.u32 2147483648, %v208_v41 }
 0x123   :  { %v210_v11 = vsel %vm127_vm2, %v209_v44, %v208_v41 }
 0x124   :  { %v213_v46 = vsel %vm126_vm3, %v472_v10, %v210_v11 }
 0x125   :  { %393 = vcosq.f32 %v213_v46 }
 0x126   :  { %395 = vsinq.f32 %v213_v46 }
 0x127   :  { %v390_v48 = vpop.eup %389 }
 0x128   :  { %v392_v50 = vpop.eup %391  ;;  %v329_v51 = vxor.u32 2147483648, %v390_v48 }
 0x129   :  { %v326_v52 = vxor.u32 2147483648, %v392_v50 }
 0x12a   :  { %v330_v33 = vsel %vm328_vm4, %v329_v51, %v392_v50 }
 0x12b   :  { %v327_v54 = vsel %vm325_vm5, %v390_v48, %v326_v52 }
 0x12c   :  { %v331_v16 = vsel %vm324_vm6, %v327_v54, %v330_v33 }
 0x12d   :  { %v332_v55 = vsel %vm321_vm7, nan, %v331_v16 }
 0x12e   :  { %334 = vst [vmem:[#allocation2 + $0x8] sm:$0xff] %v332_v55 }
 0x12f   :  { %v394_v57 = vpop.eup %393 }
 0x130   :  { %v396_v58 = vpop.eup %395  ;;  %v225_v59 = vxor.u32 2147483648, %v394_v57 }
 0x131   :  { %v222_v60 = vxor.u32 2147483648, %v396_v58 }
 0x132   :  { %v226_v61 = vsel %vm224_vm8, %v225_v59, %v396_v58 }
 0x133   :  { %v223_v62 = vsel %vm221_vm9, %v394_v57, %v222_v60 }
 0x134   :  { %v227_v63 = vsel %vm220_vm10, %v223_v62, %v226_v61 }
 0x135   :  { %v228_v9 = vsel %vm217_vm11, nan, %v227_v63 }
 0x136   :  { %333 = vst [vmem:[#allocation2] sm:$0xff] %v228_v9 }
 0x137   :  { %408 = shalt.err (!%p405_p4)
}
 0x138   :  { %s409_s26 = scalar_lea.hbm %s548_s4, 256 }
 0x139   :  { %p410_p5 = scmp.ne.s32.totalorder %s548_s4, %s409_s26  ;;  %p413_p6 = scmp.lt.u32.totalorder %s409_s26, %s548_s4 }
 0x13b   :  { %p415_p7 = pnand %p413_p6, %p410_p5 }
 0x13d   :  { %418 = shalt.err (!%p415_p7)
}
 0x13e   :  { %s428_s5 = smov 128   ;;  %s429_s6 = smov 8  }
 0x13f   :  { %346 = dma.vmem_to_hbm [thread:$0]  %s341_s2, 256, %s548_s4, [#allocation3], %s428_s5, %s428_s5, %s429_s6  }
 0x140   :  { %419 = dma.done.wait [#allocation3], 256  }
 0x141   :  { %420 = vsyncadd [#allocation3], 4294967040 }
 0x142   :  { %350 = vsyncpa [#allocation3], 1 }

</bundles_post_ra>
